<compile_context>
chip_gen: v6e
topology: v6e:2x2x1
jax: 0.10.0
libtpu: 0.0.40
codegen_flags: <defaults>
</compile_context>

<pallas_src>
import jax
import jax.numpy as jnp
from jax.experimental import pallas as pl
from jax.experimental.pallas import tpu as pltpu


def _round_up(x, m):
    return ((x + m - 1) // m) * m


def _vmem_budget():
    """(tile working-set budget, scoped vmem limit) in bytes, generation-aware."""
    try:
        cap = int(pltpu.get_tpu_info().vmem_capacity_bytes)
    except Exception:
        cap = 64 * 1024 * 1024            # conservative fallback (v7x per-core VMEM)
    budget = min(int(cap * 0.70), 100 * 1024 * 1024)   # what we size tiles against
    limit = min(int(cap * 0.90), 120 * 1024 * 1024)    # scoped VMEM limit (<= physical)
    return budget, limit


def _batch_tile(B, cap=256):
    if B <= 8:
        return B                                   # single block equal to the full batch
    tb = min(_round_up(B, 8), cap)
    # keep >= 2 steps on the (parallel) batch axis so v7x megacore can shard it
    tb = min(tb, _round_up((B + 1) // 2, 8))
    return tb


def _choose_tiles(B, N, D, budget, *, fixed_bytes, per_row_out_bytes):
    """Pick (batch_tile, token_tile) so the double-buffered f32 token blocks plus the
    per-row output/accumulator buffers and fixed (weight/bias) buffers fit `budget`."""
    n8 = _round_up(N, 8)
    tb = _batch_tile(B)
    while True:
        rem = budget - fixed_bytes - tb * (per_row_out_bytes + D * 4)
        if rem > 0:
            max_tnk = rem // (2 * tb * D * 4)          # tokens are f32, double-buffered
            if max_tnk >= n8:
                return tb, N                           # whole token axis in one block
            tnk = int(max_tnk // 8) * 8
            if tnk >= 8:
                return tb, tnk
        if tb <= 8:
            return None
        tb = max(8, (tb // 2) // 8 * 8)


def _make_fused_kernel(N, tnk, need_mask):
    """Pool over patch tokens (token-reduction grid axis, f32 accumulator) and, at the
    last token step, matmul against the resident W^T tile and add the bias."""
    scale = 1.0 / float(N - 1)

    def kernel(tok_ref, wt_ref, b_ref, o_ref, acc_ref):
        k = pl.program_id(1)
        x = tok_ref[...].astype(jnp.float32)               # [TB, TNK, D]
        if need_mask:                                       # ragged last token block
            idx = k * tnk + jax.lax.broadcasted_iota(jnp.int32, (1, tnk, 1), 1)
            x = jnp.where(idx < N, x, 0.0)
        partial = jnp.sum(x, axis=1)                        # [TB, D] f32

        @pl.when(k == 0)
        def _():
            # mean over patch tokens == (sum over all tokens - cls row) / (N - 1);
            # avoids the unaligned sublane slice x[:, 1:].
            acc_ref[...] = partial - x[:, 0, :]

        @pl.when(k > 0)
        def _():
            acc_ref[...] = acc_ref[...] + partial

        @pl.when(k == pl.num_programs(1) - 1)
        def _():
            pooled = (acc_ref[...] * scale).astype(wt_ref.dtype)
            logits = jnp.dot(pooled, wt_ref[...], preferred_element_type=jnp.float32)
            o_ref[...] = logits + b_ref[...]

    return kernel


def _make_pool_kernel(N, tnk, need_mask):
    scale = 1.0 / float(N - 1)

    def kernel(tok_ref, o_ref, acc_ref):
        k = pl.program_id(1)
        x = tok_ref[...].astype(jnp.float32)
        if need_mask:
            idx = k * tnk + jax.lax.broadcasted_iota(jnp.int32, (1, tnk, 1), 1)
            x = jnp.where(idx < N, x, 0.0)
        partial = jnp.sum(x, axis=1)

        @pl.when(k == 0)
        def _():
            acc_ref[...] = partial - x[:, 0, :]

        @pl.when(k > 0)
        def _():
            acc_ref[...] = acc_ref[...] + partial

        @pl.when(k == pl.num_programs(1) - 1)
        def _():
            o_ref[...] = (acc_ref[...] * scale).astype(o_ref.dtype)

    return kernel


def _head_kernel(p_ref, wt_ref, b_ref, o_ref):
    o_ref[...] = jnp.dot(p_ref[...], wt_ref[...],
                         preferred_element_type=jnp.float32) + b_ref[...]


def prepare_head_params(weight, bias, operand_dtype=jnp.bfloat16):
    """One-time prep of the (frozen) probe head: transpose, cast, pad classes to a
    multiple of 128 (lane-dense). Hoisted out of the per-call forward so the per-call
    HBM traffic is only tokens + one pass over W^T.

    weight: [C, D] nn.Linear layout ([out_features, in_features]); bias: [C].
    Returns (w_t [D, Cp], bias2d [1, Cp])."""
    C, D = weight.shape
    c_pad = _round_up(C, 128)
    w_t = jnp.transpose(weight).astype(operand_dtype)        # [D, C] classes on lanes
    bias2d = jnp.reshape(bias.astype(jnp.float32), (1, C))
    if c_pad != C:
        w_t = jnp.pad(w_t, ((0, 0), (0, c_pad - C)))
        bias2d = jnp.pad(bias2d, ((0, 0), (0, c_pad - C)))
    return w_t, bias2d


def linear_probing_forward(tokens, w_t, bias2d, num_classes):
    """LinearProbing head forward.

    tokens: [B, N, D]  backbone.forward_features output (cls token at index 0)
    w_t:    [D, Cp]    from prepare_head_params (Cp = round_up(num_classes, 128))
    bias2d: [1, Cp]    f32
    returns [B, num_classes] f32 logits.
    """
    B, N, D = tokens.shape
    Dw, c_pad = w_t.shape
    assert Dw == D
    assert N >= 2, "need at least one patch token besides the cls token"
    assert c_pad >= num_classes
    op_dtype = w_t.dtype
    op_bytes = jnp.dtype(op_dtype).itemsize
    tok_bytes = jnp.dtype(tokens.dtype).itemsize
    f32_b = 4

    budget, vmem_limit = _vmem_budget()

    # ---- preferred path: single fused kernel, class tile resident in VMEM ----
    fused_fixed = 2 * D * c_pad * op_bytes + 2 * 8 * c_pad * f32_b   # W^T + bias buffers
    tiles = None
    if fused_fixed <= budget // 2:
        tiles = _choose_tiles(B, N, D, budget, fixed_bytes=fused_fixed,
                              per_row_out_bytes=2 * c_pad * f32_b)
    if tiles is not None:
        tb, tnk = tiles
        nb, nk = pl.cdiv(B, tb), pl.cdiv(N, tnk)
        need_mask = (N % tnk) != 0
        out = pl.pallas_call(
            _make_fused_kernel(N, tnk, need_mask),
            out_shape=jax.ShapeDtypeStruct((B, c_pad), jnp.float32),
            grid_spec=pltpu.PrefetchScalarGridSpec(
                num_scalar_prefetch=0,
                grid=(nb, nk),
                in_specs=[
                    pl.BlockSpec((tb, tnk, D), lambda i, k: (i, k, 0)),   # token tile
                    pl.BlockSpec((D, c_pad), lambda i, k: (0, 0)),        # resident W^T
                    pl.BlockSpec((1, c_pad), lambda i, k: (0, 0)),        # resident bias
                ],
                out_specs=pl.BlockSpec((tb, c_pad), lambda i, k: (i, 0)),
                scratch_shapes=[pltpu.VMEM((tb, D), jnp.float32)],
            ),
            compiler_params=pltpu.CompilerParams(
                dimension_semantics=("parallel", "arbitrary"),
                vmem_limit_bytes=vmem_limit),
            cost_estimate=pl.CostEstimate(
                flops=B * N * D + 2 * B * D * c_pad,
                transcendentals=0,
                bytes_accessed=(B * N * D * tok_bytes + D * c_pad * op_bytes
                                + c_pad * f32_b + B * c_pad * f32_b)),
        )(tokens, w_t, bias2d)
        # Ragged last batch block reads unspecified rows; those rows never exist in the
        # (B, c_pad) output, so only valid rows are returned.
        return out[:, :num_classes]

    # ---- fallback (very large class counts): pool once, then class-tiled head ----
    tiles = _choose_tiles(B, N, D, budget, fixed_bytes=0,
                          per_row_out_bytes=2 * D * op_bytes)
    tb, tnk = tiles if tiles is not None else (8, 8)
    nb, nk = pl.cdiv(B, tb), pl.cdiv(N, tnk)
    need_mask = (N % tnk) != 0
    pooled = pl.pallas_call(
        _make_pool_kernel(N, tnk, need_mask),
        out_shape=jax.ShapeDtypeStruct((B, D), op_dtype),
        grid_spec=pltpu.PrefetchScalarGridSpec(
            num_scalar_prefetch=0,
            grid=(nb, nk),
            in_specs=[pl.BlockSpec((tb, tnk, D), lambda i, k: (i, k, 0))],
            out_specs=pl.BlockSpec((tb, D), lambda i, k: (i, 0)),
            scratch_shapes=[pltpu.VMEM((tb, D), jnp.float32)],
        ),
        compiler_params=pltpu.CompilerParams(
            dimension_semantics=("parallel", "arbitrary"),
            vmem_limit_bytes=vmem_limit),
        cost_estimate=pl.CostEstimate(
            flops=B * N * D, transcendentals=0,
            bytes_accessed=B * N * D * tok_bytes + B * D * op_bytes),
    )(tokens)

    tb2 = _batch_tile(B)
    tn = min(c_pad, 2048)
    while (2 * (tb2 * D * op_bytes + D * tn * op_bytes + 8 * tn * f32_b
                + tb2 * tn * f32_b) > budget) and tn > 128:
        tn = max(128, (tn // 2) // 128 * 128)
    out = pl.pallas_call(
        _head_kernel,
        out_shape=jax.ShapeDtypeStruct((B, c_pad), jnp.float32),
        grid_spec=pltpu.PrefetchScalarGridSpec(
            num_scalar_prefetch=0,
            grid=(pl.cdiv(B, tb2), pl.cdiv(c_pad, tn)),
            in_specs=[
                pl.BlockSpec((tb2, D), lambda i, j: (i, 0)),
                pl.BlockSpec((D, tn), lambda i, j: (0, j)),
                pl.BlockSpec((1, tn), lambda i, j: (0, j)),
            ],
            out_specs=pl.BlockSpec((tb2, tn), lambda i, j: (i, j)),
        ),
        compiler_params=pltpu.CompilerParams(
            dimension_semantics=("parallel", "parallel"),
            vmem_limit_bytes=vmem_limit),
        cost_estimate=pl.CostEstimate(
            flops=2 * B * D * c_pad, transcendentals=0,
            bytes_accessed=(B * D * op_bytes + D * c_pad * op_bytes
                            + c_pad * f32_b + B * c_pad * f32_b)),
    )(pooled, w_t, bias2d)
    return out[:, :num_classes]


def reference_forward(tokens, weight, bias):
    pooled = tokens[:, 1:, :].mean(axis=1)
    return pooled @ weight.T + bias[None, :]


if __name__ == "__main__":
    # Small shapes consistent with the module: B=8 clips, N=9 tokens
    # (1 cls + 8 patch tokens), D=128 backbone features, num_classes=400
    # (module default; exercises the C % 128 != 0 padding path).
    B, N, D, num_classes = 8, 9, 128, 400

    key = jax.random.PRNGKey(0)
    k_x, k_w = jax.random.split(key)

    # "backbone.forward_features(x)" output (frozen backbone -> treated as input).
    tokens = jax.random.normal(k_x, (B, N, D), dtype=jnp.float32)

    # Head params: trunc_normal_(std=0.02) weight, zero bias (deterministic init).
    weight = (
        jax.random.truncated_normal(k_w, -2.0, 2.0, (num_classes, D), dtype=jnp.float32)
        * 0.02
    )  # nn.Linear layout: [out_features, in_features]
    bias = jnp.zeros((num_classes,), dtype=jnp.float32)

    # One-time prep of the frozen head (transpose + bf16 cast + lane pad) — hoisted
    # out of the per-call forward.
    w_t, bias2d = prepare_head_params(weight, bias, operand_dtype=jnp.bfloat16)

    out = jax.block_until_ready(linear_probing_forward(tokens, w_t, bias2d, num_classes))
    ref = reference_forward(tokens, weight, bias)

    assert out.shape == (B, num_classes)
    # bf16 operands / f32 accumulation: loose-but-meaningful tolerance
    # (bf16 noise ~1e-3; a wrong pooling divisor would show up at ~3e-2).
    assert float(jnp.max(jnp.abs(out - ref))) < 5e-3

    print("KERNEL_OK")
</pallas_src>

<mosaic_0001>
module attributes {stable_mosaic.version = 11 : i64} {
  func.func @kernel(%arg0: i32, %arg1: i32, %arg2: memref<8x9x128xf32, #tpu.memory_space<vmem>>, %arg3: memref<128x512xbf16, #tpu.memory_space<vmem>>, %arg4: memref<1x512xf32, #tpu.memory_space<vmem>>, %arg5: memref<8x512xf32, #tpu.memory_space<vmem>>, %arg6: memref<8x128xf32, #tpu.memory_space<vmem>>) attributes {dimension_semantics = [#tpu.dimension_semantics<parallel>, #tpu.dimension_semantics<arbitrary>], iteration_bounds = array<i64: 1, 1>, scalar_prefetch = 0 : i64, scratch_operands = 1 : i64, tpu.core_type = #tpu.core_type<tc>, window_params = [{transform_indices = @transform_0, window_bounds = array<i64: 8, 9, 128>}, {pipeline_mode = #tpu.pipeline_mode<synchronous>, transform_indices = @transform_1, window_bounds = array<i64: 128, 512>}, {pipeline_mode = #tpu.pipeline_mode<synchronous>, transform_indices = @transform_2, window_bounds = array<i64: 1, 512>}, {transform_indices = @transform_3, window_bounds = array<i64: 8, 512>}]} {
    %c0 = arith.constant 0 : index
    %c0_0 = arith.constant 0 : index
    %c0_1 = arith.constant 0 : index
    %0 = vector.load %arg2[%c0, %c0_0, %c0_1] : memref<8x9x128xf32, #tpu.memory_space<vmem>>, vector<8x9x128xf32>
    %cst = arith.constant dense<0.000000e+00> : vector<8x128xf32>
    %1 = vector.multi_reduction <add>, %0, %cst [1] : vector<8x9x128xf32> to vector<8x128xf32>
    %c0_i32 = arith.constant 0 : i32
    %2 = arith.cmpi eq, %arg1, %c0_i32 : i32
    %3 = arith.extui %2 : i1 to i32
    %c0_i32_2 = arith.constant 0 : i32
    %4 = arith.cmpi ne, %3, %c0_i32_2 : i32
    scf.if %4 {
      %11 = vector.extract_strided_slice %0 {offsets = [0, 0, 0], sizes = [8, 1, 128], strides = [1, 1, 1]} : vector<8x9x128xf32> to vector<8x1x128xf32>
      %12 = vector.shape_cast %11 : vector<8x1x128xf32> to vector<8x128xf32>
      %13 = arith.subf %1, %12 : vector<8x128xf32>
      %c0_7 = arith.constant 0 : index
      %c0_8 = arith.constant 0 : index
      %14 = vector.load %arg6[%c0_7, %c0_8] : memref<8x128xf32, #tpu.memory_space<vmem>>, vector<8x128xf32>
      tpu.vector_store %arg6[%c0_7, %c0_8], %13 {strides = array<i32>} : memref<8x128xf32, #tpu.memory_space<vmem>>, vector<8x128xf32>,
    } else {
    }
    %c0_i32_3 = arith.constant 0 : i32
    %5 = arith.cmpi sgt, %arg1, %c0_i32_3 : i32
    %6 = arith.extui %5 : i1 to i32
    %c0_i32_4 = arith.constant 0 : i32
    %7 = arith.cmpi ne, %6, %c0_i32_4 : i32
    scf.if %7 {
      %c0_7 = arith.constant 0 : index
      %c0_8 = arith.constant 0 : index
      %11 = vector.load %arg6[%c0_7, %c0_8] : memref<8x128xf32, #tpu.memory_space<vmem>>, vector<8x128xf32>
      %12 = arith.addf %11, %1 : vector<8x128xf32>
      %c0_9 = arith.constant 0 : index
      %c0_10 = arith.constant 0 : index
      %13 = vector.load %arg6[%c0_9, %c0_10] : memref<8x128xf32, #tpu.memory_space<vmem>>, vector<8x128xf32>
      tpu.vector_store %arg6[%c0_9, %c0_10], %12 {strides = array<i32>} : memref<8x128xf32, #tpu.memory_space<vmem>>, vector<8x128xf32>,
    } else {
    }
    %c0_i32_5 = arith.constant 0 : i32
    %8 = arith.cmpi eq, %arg1, %c0_i32_5 : i32
    %9 = arith.extui %8 : i1 to i32
    %c0_i32_6 = arith.constant 0 : i32
    %10 = arith.cmpi ne, %9, %c0_i32_6 : i32
    scf.if %10 {
      %c0_7 = arith.constant 0 : index
      %c0_8 = arith.constant 0 : index
      %11 = vector.load %arg6[%c0_7, %c0_8] : memref<8x128xf32, #tpu.memory_space<vmem>>, vector<8x128xf32>
      %cst_9 = arith.constant 1.250000e-01 : f32
      %12 = vector.broadcast %cst_9 : f32 to vector<8x128xf32>
      %13 = arith.mulf %11, %12 : vector<8x128xf32>
      %14 = arith.truncf %13 : vector<8x128xf32> to vector<8x128xbf16>
      %c0_10 = arith.constant 0 : index
      %c0_11 = arith.constant 0 : index
      %15 = vector.load %arg3[%c0_10, %c0_11] : memref<128x512xbf16, #tpu.memory_space<vmem>>, vector<128x512xbf16>
      %cst_12 = arith.constant dense<0.000000e+00> : vector<8x512xf32>
      %16 = tpu.matmul %14, %15, %cst_12 {dimension_numbers = #tpu.dot_dimension_numbers<[1], [0], [0], [1], [0, 0, 1, 1], [], []>} : vector<8x128xbf16>, vector<128x512xbf16>, vector<8x512xf32> -> vector<8x512xf32>
      %c0_13 = arith.constant 0 : index
      %c0_14 = arith.constant 0 : index
      %17 = vector.load %arg4[%c0_13, %c0_14] : memref<1x512xf32, #tpu.memory_space<vmem>>, vector<1x512xf32>
      %18 = vector.broadcast %17 : vector<1x512xf32> to vector<8x512xf32>
      %19 = arith.addf %16, %18 : vector<8x512xf32>
      %c0_15 = arith.constant 0 : index
      %c0_16 = arith.constant 0 : index
      %20 = vector.load %arg5[%c0_15, %c0_16] : memref<8x512xf32, #tpu.memory_space<vmem>>, vector<8x512xf32>
      tpu.vector_store %arg5[%c0_15, %c0_16], %19 {strides = array<i32>} : memref<8x512xf32, #tpu.memory_space<vmem>>, vector<8x512xf32>,
    } else {
    }
    return
  }
  func.func @transform_0(%arg0: i32, %arg1: i32) -> (i32, i32, i32) {
    %c0_i32 = arith.constant 0 : i32
    %c0_i32_0 = arith.constant 0 : i32
    return %arg0, %arg1, %c0_i32 : i32, i32, i32
  }
  func.func @transform_1(%arg0: i32, %arg1: i32) -> (i32, i32) {
    %c0_i32 = arith.constant 0 : i32
    %c0_i32_0 = arith.constant 0 : i32
    %c0_i32_1 = arith.constant 0 : i32
    return %c0_i32, %c0_i32_0 : i32, i32
  }
  func.func @transform_2(%arg0: i32, %arg1: i32) -> (i32, i32) {
    %c0_i32 = arith.constant 0 : i32
    %c0_i32_0 = arith.constant 0 : i32
    %c0_i32_1 = arith.constant 0 : i32
    return %c0_i32, %c0_i32_0 : i32, i32
  }
  func.func @transform_3(%arg0: i32, %arg1: i32) -> (i32, i32) {
    %c0_i32 = arith.constant 0 : i32
    %c0_i32_0 = arith.constant 0 : i32
    return %arg0, %c0_i32 : i32, i32
  }
}

</mosaic_0001>

<bundles_post_ra>
// kernel: tpu_custom_call.1
= control target key start
LH: loop header
LB: loop body
LE: loop exit
PB: predicated region body
PF: predicated region fallthrough
CT: control target
= control target key end

     0   :  { %8 = vsyncpa [#allocation4], 0  ;;  %s759_s0 = inlined_call_operand.vmem [shape: f32[8,9,128], index: 0, kind: input, shape index: {}]   ;;  %s760_s1 = inlined_call_operand.hbm [shape: bf16[128,512], index: 1, kind: input, shape index: {}]   ;;  %s761_s2 = inlined_call_operand.vmem [shape: f32[1,512], index: 2, kind: input, shape index: {}]   ;;  %s762_s3 = inlined_call_operand.hbm [shape: f32[8,512], index: 3, kind: output, shape index: {}]  }
   0x1   :  { %9 = vsyncpa [#allocation5], 0  ;;  %s634_s12 = smov [#allocation3]  }
   0x2   :  { %s17_s13 = sshll.u32 %s634_s12, 4  ;;  %s18_s13 = int_to_ptr.vmem [resolvable:$true] %s17_s13 }
   0x3   :  { %s598_s14 = scalar_lea.vmem %s18_s13, 4096  ;;  %p603_p1 = scmp.lt.s32.totalorder %s18_s13, %s18_s13 }
   0x4   :  { %p599_p0 = scmp.ne.s32.totalorder %s18_s13, %s598_s14  ;;  %p604_p2 = scmp.lt.s32.totalorder %s598_s14, %s598_s14 }
   0x6   :  { %p605_p3 = por %p604_p2, %p603_p1 }
   0x8   :  { %p606_p4 = pnand %p605_p3, %p599_p0 }
   0xa   :  { %609 = shalt.err (!%p606_p4)
}
   0xb   :  { %s635_s15 = smov 256   ;;  %s636_s16 = smov 16  }
   0xc   :  { %23 = dma.hbm_to_vmem [thread:$0]  %s760_s1, 4096, %s18_s13, [#allocation4], %s635_s15, %s635_s15, %s636_s16  }
   0xd   :  { %630 = dma.done.wait [#allocation4], 4096  }
   0xe   :  { %631 = vsyncadd [#allocation4], 4294963200  ;;  %v637_v0 = vmov 0   ;;  %v542_v1 = vld [vmem:[#allocation3 + $0xe4] ss:$16 sps:$4 sm:$0xff]   ;;  %vm46_vm0 = vcmask 1040384  }
   0xf   :  { %436 = vmatprep.mubr.bf16.mxu0 %v637_v0  ;;  %477 = vmatprep.mubr.bf16.mxu1 %v637_v0  ;;  %v544_v2 = vld [vmem:[#allocation3 + $0xec] ss:$16 sps:$4 sm:$0xff]   ;;  %v546_v3 = vld [vmem:[#allocation3 + $0xe0] ss:$16 sps:$4 sm:$0xff]   ;;  %v547_v4 = vld [vmem:[#allocation3 + $0xe8] ss:$16 sps:$4 sm:$0xff]  }
  0x10   :  { %404 = vmatprep.subr.bf16.mxu0 %v542_v1  ;;  %445 = vmatprep.subr.bf16.mxu1 %v544_v2  ;;  %v548_v5 = vld [vmem:[#allocation3 + $0xc4] ss:$16 sps:$4 sm:$0xff]   ;;  %v550_v6 = vld [vmem:[#allocation3 + $0xcc] ss:$16 sps:$4 sm:$0xff]   ;;  %v552_v7 = vld [vmem:[#allocation3 + $0xc0] ss:$16 sps:$4 sm:$0xff]  }
  0x11   :  { %405 = vmatpush1.bf16.msra.mxu0 %v546_v3  ;;  %446 = vmatpush1.bf16.msra.mxu1 %v547_v4  ;;  %v553_v8 = vld [vmem:[#allocation3 + $0xc8] ss:$16 sps:$4 sm:$0xff]   ;;  %v554_v9 = vld [vmem:[#allocation3 + $0xa4] ss:$16 sps:$4 sm:$0xff]   ;;  %v556_v10 = vld [vmem:[#allocation3 + $0xac] ss:$16 sps:$4 sm:$0xff]  }
  0x12   :  { %406 = vmatprep.subr.bf16.mxu0 %v548_v5  ;;  %447 = vmatprep.subr.bf16.mxu1 %v550_v6  ;;  %v558_v11 = vld [vmem:[#allocation3 + $0xa0] ss:$16 sps:$4 sm:$0xff]   ;;  %v559_v12 = vld [vmem:[#allocation3 + $0xa8] ss:$16 sps:$4 sm:$0xff]   ;;  %v560_v13 = vld [vmem:[#allocation3 + $0x84] ss:$16 sps:$4 sm:$0xff]  }
  0x13   :  { %v562_v14 = vld [vmem:[#allocation3 + $0x8c] ss:$16 sps:$4 sm:$0xff]   ;;  %v564_v15 = vld [vmem:[#allocation3 + $0x80] ss:$16 sps:$4 sm:$0xff]   ;;  %v565_v16 = vld [vmem:[#allocation3 + $0x88] ss:$16 sps:$4 sm:$0xff]  }
  0x14   :  { %v566_v17 = vld [vmem:[#allocation3 + $0x64] ss:$16 sps:$4 sm:$0xff]   ;;  %v568_v18 = vld [vmem:[#allocation3 + $0x6c] ss:$16 sps:$4 sm:$0xff]   ;;  %v570_v19 = vld [vmem:[#allocation3 + $0x60] ss:$16 sps:$4 sm:$0xff]  }
  0x15   :  { %407 = vmatpush1.bf16.msra.mxu0 %v552_v7  ;;  %448 = vmatpush1.bf16.msra.mxu1 %v553_v8  ;;  %v571_v20 = vld [vmem:[#allocation3 + $0x68] ss:$16 sps:$4 sm:$0xff]   ;;  %v572_v21 = vld [vmem:[#allocation3 + $0x44] ss:$16 sps:$4 sm:$0xff]   ;;  %v574_v22 = vld [vmem:[#allocation3 + $0x4c] ss:$16 sps:$4 sm:$0xff]  }
  0x16   :  { %408 = vmatprep.subr.bf16.mxu0 %v554_v9  ;;  %449 = vmatprep.subr.bf16.mxu1 %v556_v10  ;;  %v576_v23 = vld [vmem:[#allocation3 + $0x40] ss:$16 sps:$4 sm:$0xff]   ;;  %v577_v24 = vld [vmem:[#allocation3 + $0x48] ss:$16 sps:$4 sm:$0xff]   ;;  %v578_v25 = vld [vmem:[#allocation3 + $0x24] ss:$16 sps:$4 sm:$0xff]  }
  0x17   :  { %v580_v26 = vld [vmem:[#allocation3 + $0x2c] ss:$16 sps:$4 sm:$0xff]   ;;  %v665_v27 = vld [vmem:[%s759_s0] sm:$0xff]  ;;  %v31_v28 = vld [vmem:[%s759_s0 + $0x8] sm:$0x1]  ;;  %vm132_vm1 = vcmask 1041409  }
  0x18   :  { %v582_v29 = vld [vmem:[#allocation3 + $0x20] ss:$16 sps:$4 sm:$0xff]   ;;  %v583_v30 = vld [vmem:[#allocation3 + $0x28] ss:$16 sps:$4 sm:$0xff]   ;;  %v47_v34 = vsel %vm46_vm0, %v31_v28, 0.0  ;;  %vm135_vm2 = vcmask 1042434  }
  0x19   :  { %409 = vmatpush1.bf16.msra.mxu0 %v558_v11  ;;  %450 = vmatpush1.bf16.msra.mxu1 %v559_v12  ;;  %v673_v31 = vld [vmem:[%s759_s0 + $0x10] sm:$0xff]  ;;  %v33_v32 = vld [vmem:[%s759_s0 + $0x18] sm:$0x1]  ;;  %v681_v33 = vld [vmem:[%s759_s0 + $0x20] sm:$0xff]  ;;  %v48_v40 = vadd.f32 %v47_v34, %v665_v27  ;;  %vm138_vm3 = vcmask 1043459   ;;  %vm141_vm4 = vcmask 1044484  }
  0x1a   :  { %410 = vmatprep.subr.bf16.mxu0 %v560_v13  ;;  %451 = vmatprep.subr.bf16.mxu1 %v562_v14  ;;  %v584_v35 = vld [vmem:[#allocation3 + $0x4] ss:$16 sps:$4 sm:$0xff]   ;;  %v586_v36 = vld [vmem:[#allocation3 + $0xc] ss:$16 sps:$4 sm:$0xff]   ;;  %v35_v37 = vld [vmem:[%s759_s0 + $0x28] sm:$0x1] }
  0x1b   :  { %v690_v38 = vld [vmem:[%s759_s0 + $0x30] sm:$0xff]  ;;  %v37_v39 = vld [vmem:[%s759_s0 + $0x38] sm:$0x1]  ;;  %v55_v41 = vsel %vm46_vm0, %v33_v32, 0.0  ;;  %v700_v42 = vld [vmem:[%s759_s0 + $0x40] sm:$0xff]  ;;  %v63_v45 = vsel %vm46_vm0, %v35_v37, 0.0 }
  0x1c   :  { %v39_v43 = vld [vmem:[%s759_s0 + $0x48] sm:$0x1]  ;;  %v56_v44 = vadd.f32 %v55_v41, %v673_v31  ;;  %v71_v46 = vsel %vm46_vm0, %v37_v39, 0.0  ;;  %v711_v47 = vld [vmem:[%s759_s0 + $0x50] sm:$0xff]  ;;  %v41_v48 = vld [vmem:[%s759_s0 + $0x58] sm:$0x1]  ;;  %v64_v51 = vadd.f32 %v63_v45, %v681_v33 }
  0x1d   :  { %411 = vmatpush1.bf16.msra.mxu0 %v564_v15  ;;  %452 = vmatpush1.bf16.msra.mxu1 %v565_v16  ;;  %v43_v49 = vld [vmem:[%s759_s0 + $0x68] sm:$0x1]  ;;  %v49_v50 = vrot.slane %v48_v40, 4  ;;  %v72_v52 = vadd.f32 %v71_v46, %v690_v38  ;;  %v45_v53 = vld [vmem:[%s759_s0 + $0x78] sm:$0x1]  ;;  %v79_v55 = vsel %vm46_vm0, %v39_v43, 0.0 }
  0x1e   :  { %412 = vmatprep.subr.bf16.mxu0 %v566_v17  ;;  %453 = vmatprep.subr.bf16.mxu1 %v568_v18  ;;  %v57_v54 = vrot.slane %v56_v44, 4  ;;  %v87_v56 = vsel %vm46_vm0, %v41_v48, 0.0  ;;  %v729_v57 = vld [vmem:[%s759_s0 + $0x60] sm:$0xff]  ;;  %v734_v58 = vld [vmem:[%s759_s0 + $0x70] sm:$0xff]  ;;  %v65_v60 = vrot.slane %v64_v51, 4  ;;  %v80_v62 = vadd.f32 %v79_v55, %v700_v42  ;;  %s638_s23 = smov [#allocation6]  }
  0x1f   :  { %v50_v59 = vadd.f32 %v49_v50, %v48_v40  ;;  %v73_v61 = vrot.slane %v72_v52, 4  ;;  %v588_v63 = vld [vmem:[#allocation3] ss:$16 sps:$4 sm:$0xff]   ;;  %v589_v0 = vld [vmem:[#allocation3 + $0x8] ss:$16 sps:$4 sm:$0xff]   ;;  %v88_v2 = vadd.f32 %v87_v56, %v711_v47  ;;  %v95_v3 = vsel %vm46_vm0, %v43_v49, 0.0 }
  0x20   :  { %v58_v1 = vadd.f32 %v57_v54, %v56_v44  ;;  %v103_v4 = vsel %vm46_vm0, %v45_v53, 0.0  ;;  %v66_v6 = vadd.f32 %v65_v60, %v64_v51  ;;  %v81_v8 = vrot.slane %v80_v62, 4  ;;  %s496_s24 = sshll.u32 %s638_s23, 4  ;;  %s497_s24 = int_to_ptr.vmem [resolvable:$true] %s496_s24 }
  0x21   :  { %413 = vmatpush1.bf16.msra.mxu0 %v570_v19  ;;  %454 = vmatpush1.bf16.msra.mxu1 %v571_v20  ;;  %v51_v5 = vrot.slane %v50_v59, 2  ;;  %v74_v7 = vadd.f32 %v73_v61, %v72_v52  ;;  %v89_v10 = vrot.slane %v88_v2, 4  ;;  %v96_v11 = vadd.f32 %v95_v3, %v729_v57  ;;  %p615_p6 = scmp.lt.s32.totalorder %s497_s24, %s497_s24 }
  0x22   :  { %414 = vmatprep.subr.bf16.mxu0 %v572_v21  ;;  %455 = vmatprep.subr.bf16.mxu1 %v574_v22  ;;  %v59_v9 = vrot.slane %v58_v1, 2  ;;  %v104_v12 = vadd.f32 %v103_v4, %v734_v58  ;;  %v67_v14 = vrot.slane %v66_v6, 2  ;;  %v82_v16 = vadd.f32 %v81_v8, %v80_v62 }
  0x23   :  { %v52_v13 = vadd.f32 %v51_v5, %v50_v59  ;;  %v75_v15 = vrot.slane %v74_v7, 2  ;;  %v90_v18 = vadd.f32 %v89_v10, %v88_v2  ;;  %v97_v19 = vrot.slane %v96_v11, 4 }
  0x24   :  { %v60_v17 = vadd.f32 %v59_v9, %v58_v1  ;;  %v105_v20 = vrot.slane %v104_v12, 4  ;;  %v68_v22 = vadd.f32 %v67_v14, %v66_v6  ;;  %vm144_vm5 = vcmask 1045509  }
  0x25   :  { %415 = vmatpush1.bf16.msra.mxu0 %v576_v23  ;;  %456 = vmatpush1.bf16.msra.mxu1 %v577_v24  ;;  %v53_v21 = vrot.slane %v52_v13, 1  ;;  %v76_v23 = vadd.f32 %v75_v15, %v74_v7  ;;  %v83_v24 = vrot.slane %v82_v16, 2  ;;  %v98_v28 = vadd.f32 %v97_v19, %v96_v11 }
  0x26   :  { %416 = vmatprep.subr.bf16.mxu0 %v578_v25  ;;  %457 = vmatprep.subr.bf16.mxu1 %v580_v26  ;;  %v61_v25 = vrot.slane %v60_v17, 1  ;;  %v91_v26 = vrot.slane %v90_v18, 2  ;;  %v69_v32 = vrot.slane %v68_v22, 1  ;;  %vm147_vm6 = vcmask 1046534  }
  0x27   :  { %v77_v34 = vrot.slane %v76_v23, 1  ;;  %v99_v39 = vrot.slane %v98_v28, 2  ;;  %vm150_vm7 = vcmask 1047559   ;;  %v224_v11 = vlaneseq }
  0x28   :  { %v92_v37 = vadd.f32 %v91_v26, %v90_v18  ;;  %v70_v41 = vadd.f32 %v69_v32, %v68_v22 }
  0x29   :  { %417 = vmatpush1.bf16.msra.mxu0 %v582_v29  ;;  %458 = vmatpush1.bf16.msra.mxu1 %v583_v30  ;;  %v106_v29 = vadd.f32 %v105_v20, %v104_v12  ;;  %v54_v30 = vadd.f32 %v53_v21, %v52_v13  ;;  %v78_v43 = vadd.f32 %v77_v34, %v76_v23  ;;  %v225_v12 = vshrl.u32 %v224_v11, 7 }
  0x2a   :  { %418 = vmatprep.subr.bf16.mxu0 %v584_v35  ;;  %459 = vmatprep.subr.bf16.mxu1 %v586_v36  ;;  %v84_v35 = vadd.f32 %v83_v24, %v82_v16  ;;  %v62_v36 = vadd.f32 %v61_v25, %v60_v17  ;;  %v93_v46 = vrot.slane %v92_v37, 1  ;;  %v100_v48 = vadd.f32 %v99_v39, %v98_v28 }
  0x2b   :  { %v107_v40 = vrot.slane %v106_v29, 2  ;;  %v115_v45 = vsub.f32 %v54_v30, %v665_v27  ;;  %v117_v52 = vsub.f32 %v70_v41, %v681_v33  ;;  %v118_v53 = vsub.f32 %v78_v43, %v690_v38 }
  0x2c   :  { %v85_v44 = vrot.slane %v84_v35, 1  ;;  %v116_v50 = vsub.f32 %v62_v36, %v673_v31  ;;  %v94_v54 = vadd.f32 %v93_v46, %v92_v37  ;;  %v101_v55 = vrot.slane %v100_v48, 1 }
  0x2d   :  { %419 = vmatpush1.bf16.msra.mxu0 %v588_v63  ;;  %460 = vmatpush1.bf16.msra.mxu1 %v589_v0  ;;  %v108_v49 = vadd.f32 %v107_v40, %v106_v29  ;;  %v134_v61 = vrot.slane %v117_v52, 6  ;;  %v137_v62 = vrot.slane %v118_v53, 5  ;;  %v234_v13 = vsub.s32 2, %v225_v12 }
  0x2e   :  { %v86_v51 = vadd.f32 %v85_v44, %v84_v35  ;;  %v131_v59 = vrot.slane %v116_v50, 7  ;;  %v102_v27 = vadd.f32 %v101_v55, %v100_v48  ;;  %v120_v0 = vsub.f32 %v94_v54, %v711_v47 }
  0x2f   :  { %v109_v56 = vrot.slane %v108_v49, 1  ;;  %v230_v14 = vsub.s32 1, %v225_v12  ;;  %v238_v15 = vsub.s32 3, %v225_v12 }
  0x30   :  { %v119_v60 = vsub.f32 %v86_v51, %v700_v42  ;;  %v133_v31 = vsel %vm132_vm1, %v131_v59, %v115_v45  ;;  %v121_v38 = vsub.f32 %v102_v27, %v729_v57  ;;  %v143_v42 = vrot.slane %v120_v0, 3 }
  0x31   :  { %v110_v63 = vadd.f32 %v109_v56, %v108_v49  ;;  %v136_v33 = vsel %vm135_vm2, %v134_v61, %v133_v31  ;;  %v226_v57 = vsub.s32 0, %v225_v12 }
  0x32   :  { %v140_v1 = vrot.slane %v119_v60, 4  ;;  %v139_v3 = vsel %vm138_vm3, %v137_v62, %v136_v33  ;;  %v146_v6 = vrot.slane %v121_v38, 2 }
  0x33   :  { %v122_v2 = vsub.f32 %v110_v63, %v734_v58  ;;  %v222_v58 = vld [vmem:[%s761_s2] sm:$0xf]  ;;  %s610_s2 = scalar_lea.vmem %s497_s24, 512 }
  0x34   :  { %v142_v4 = vsel %vm141_vm4, %v140_v1, %v139_v3  ;;  %v227_v16 = vrot.slane %v222_v58, %v226_v57  ;;  %v235_v17 = vrot.slane %v222_v58, %v234_v13  ;;  %v231_v18 = vrot.slane %v222_v58, %v230_v14  ;;  %p611_p5 = scmp.ne.s32.totalorder %s497_s24, %s610_s2  ;;  %p616_p7 = scmp.lt.s32.totalorder %s610_s2, %s610_s2 }
  0x35   :  { %v145_v5 = vsel %vm144_vm5, %v143_v42, %v142_v4  ;;  %v149_v7 = vrot.slane %v122_v2, 1  ;;  %v239_v19 = vrot.slane %v222_v58, %v238_v15 }
  0x36   :  { %v148_v47 = vsel %vm147_vm6, %v146_v6, %v145_v5  ;;  %p617_p8 = por %p616_p7, %p615_p6 }
  0x37   :  { %v151_v8 = vsel %vm150_vm7, %v149_v7, %v148_v47 }
  0x38   :  { %v188_v9 = vmul.f32 0.125, %v151_v8  ;;  %p618_p9 = pnand %p617_p8, %p611_p5 }
  0x3a   :  { %v189_v10 = vpack.c.bf16 %v188_v9, %v188_v9 }
  0x3c   :  { %437 = vmatmul.mubr.bf16.vlgmr.msra.gmra.mxu0 %v189_v10  ;;  %478 = vmatmul.mubr.bf16.vlgmr.msra.gmra.mxu1 %v189_v10 }
  0xfc   :  { %v438_v20 = vpop.f32.mrf.mxu0  ;;  %v479_v21 = vpop.f32.mrf.mxu1 }
  0xfd   :  { %v439_v22 = vadd.f32 %v438_v20, %v227_v16  ;;  %v480_v23 = vadd.f32 %v479_v21, %v235_v17 }
  0xfe   :  { %v440_v24 = vpop.f32.mrf.mxu0  ;;  %v481_v25 = vpop.f32.mrf.mxu1 }
  0xff   :  { %486 = vst [vmem:[#allocation6] sm:$0xff] %v439_v22  ;;  %488 = vst [vmem:[#allocation6 + $0x10] sm:$0xff] %v480_v23  ;;  %v441_v26 = vadd.f32 %v440_v24, %v231_v18  ;;  %v482_v28 = vadd.f32 %v481_v25, %v239_v19 }
 0x100   :  { %v442_v29 = vpop.f32.mrf.mxu0  ;;  %v483_v30 = vpop.f32.mrf.mxu1 }
 0x101   :  { %487 = vst [vmem:[#allocation6 + $0x8] sm:$0xff] %v441_v26  ;;  %489 = vst [vmem:[#allocation6 + $0x18] sm:$0xff] %v482_v28 }
 0x102   :  { %v443_v32 = vpop.f32.mrf.mxu0  ;;  %v484_v34 = vpop.f32.mrf.mxu1 }
 0x103   :  { %621 = shalt.err (!%p618_p9)
}
 0x104   :  { %499 = dma.vmem_to_hbm [thread:$0]  %s497_s24, 512, %s762_s3, [#allocation5]  }
 0x105   :  { %632 = dma.done.wait [#allocation5], 512  }
 0x106   :  { %633 = vsyncadd [#allocation5], 4294966784 }
 0x107   :  { %503 = vsyncpa [#allocation4], 1 }
 0x108   :  { %504 = vsyncpa [#allocation5], 1 }

</bundles_post_ra>
